<compile_context>
chip_gen: v7x
topology: tpu7x:2x2x1
jax: 0.10.0
libtpu: 0.0.40
codegen_flags: <defaults>
</compile_context>

<pallas_src>
import functools

import jax
import jax.numpy as jnp
from jax import lax
from jax.experimental import pallas as pl
from jax.experimental.pallas import tpu as pltpu

BN_EPS = 1e-5
LN_EPS = 1e-5
_TM_MAX = 4096   # max rows (points) per grid step (~512 KB / buffer @ 32 ch f32)
_MIN_GRID = 2    # keep >=2 grid steps so v7x's two TensorCores both get work


# ----------------------------- Pallas kernel -------------------------------- #

def _fused_mlp_kernel(n_mapping, m_valid, tm, x_ref, *refs):
    """Fused [Linear+BN(eval)+ReLU] x n_mapping  ->  Linear+bias  ->  LayerNorm.

    refs = [w0, w1, ..., w_{n_mapping-1}, w_prenorm, vec_pack, o_ref]
      * w_j are the folded-BN weights (C_in_j, C_out_j), bf16.
      * vec_pack (n_vec, C_max) f32 rows: [b0..b_{n-1}, b_pn, ln_gamma, ln_beta].
    """
    o_ref = refs[-1]
    vec_ref = refs[-2]
    w_refs = refs[:-2]

    vecs = vec_ref[...].astype(jnp.float32)          # (n_vec, C_max)
    x = x_ref[...].astype(jnp.bfloat16)               # bf16 operands for the MXU

    # mapping_mlp: MXU dot (bf16 x bf16 -> f32) + folded-BN bias + ReLU.
    for j in range(n_mapping):
        w = w_refs[j][...]                             # (Ci, Co) bf16
        co = w.shape[1]
        b = vecs[j:j + 1, :co]                         # (1, Co) f32
        z = jnp.dot(x, w, preferred_element_type=jnp.float32) + b
        x = jnp.maximum(z, 0.0).astype(jnp.bfloat16)

    # prenorm: Linear(bias) -> LayerNorm over the channel (lane) axis, f32 math.
    w_pn = w_refs[n_mapping][...]                      # (Ct, Ct) bf16
    ct = w_pn.shape[1]
    b_pn = vecs[n_mapping:n_mapping + 1, :ct]
    g = vecs[n_mapping + 1:n_mapping + 2, :ct]
    beta = vecs[n_mapping + 2:n_mapping + 3, :ct]

    z = jnp.dot(x, w_pn, preferred_element_type=jnp.float32) + b_pn
    mu = jnp.mean(z, axis=-1, keepdims=True)
    var = jnp.mean((z - mu) * (z - mu), axis=-1, keepdims=True)
    y = (z - mu) * lax.rsqrt(var + LN_EPS) * g + beta

    # Zero the ragged tail of the (only) partial edge block; Pallas only writes
    # the in-bounds rows back anyway, this is cheap insurance against garbage.
    rows = pl.program_id(0) * tm + lax.broadcasted_iota(jnp.int32, y.shape, 0)
    y = jnp.where(rows < m_valid, y, 0.0)

    o_ref[...] = y.astype(o_ref.dtype)


def _choose_tile(m):
    """Largest row tile <= _TM_MAX, multiple of 8, keeping >= _MIN_GRID steps."""
    per_step = -(-m // _MIN_GRID)                 # ceil(m / _MIN_GRID)
    tm = ((per_step + 7) // 8) * 8
    return max(8, min(_TM_MAX, tm))


def fused_source_mlp(x, mapping_wb, prenorm):
    """Run the whole per-source MLP chain in a single pallas_call.

    x: (M, C_in) features (f32).
    mapping_wb: list of (w_folded (Ci, Co), b_folded (1, Co)) per mapping layer.
    prenorm: dict with 'w_t' (Ct, Ct), 'b', 'ln_gamma', 'ln_beta' each (1, Ct).
    """
    m, c_in = x.shape
    c_target = prenorm["w_t"].shape[1]
    n_mapping = len(mapping_wb)

    tm = _choose_tile(m)
    grid = (pl.cdiv(m, tm),)

    # Pack every small (1, C) vector into a single (n_vec, C_max) f32 array so
    # it costs one constant-index BlockSpec / DMA instead of 4+.
    c_max = max([c_in, c_target] + [w.shape[1] for w, _ in mapping_wb])
    vec_rows = [jnp.pad(b, ((0, 0), (0, c_max - b.shape[1])))
                for _, b in mapping_wb]
    for name in ("b", "ln_gamma", "ln_beta"):
        v = prenorm[name]
        vec_rows.append(jnp.pad(v, ((0, 0), (0, c_max - v.shape[1]))))
    vec_pack = jnp.concatenate(vec_rows, axis=0).astype(jnp.float32)

    def const_spec(a):
        return pl.BlockSpec(a.shape, lambda i: (0, 0))

    args = [x]
    in_specs = [pl.BlockSpec((tm, c_in), lambda i: (i, 0))]
    for w, _ in mapping_wb:
        wb = w.astype(jnp.bfloat16)               # bf16 MXU operand
        args.append(wb)
        in_specs.append(const_spec(wb))
    w_pn = prenorm["w_t"].astype(jnp.bfloat16)
    args.append(w_pn)
    in_specs.append(const_spec(w_pn))
    args.append(vec_pack)
    in_specs.append(const_spec(vec_pack))

    kernel = functools.partial(_fused_mlp_kernel, n_mapping, m, tm)

    out = pl.pallas_call(
        kernel,
        out_shape=jax.ShapeDtypeStruct((m, c_target), x.dtype),
        grid_spec=pltpu.PrefetchScalarGridSpec(
            num_scalar_prefetch=0,
            grid=grid,
            in_specs=in_specs,
            out_specs=pl.BlockSpec((tm, c_target), lambda i: (i, 0)),
        ),
        compiler_params=pltpu.CompilerParams(
            dimension_semantics=("parallel",)),
    )(*args)
    return out


# ----------------------------- parameter setup ----------------------------- #

def init_source_params(key, c_in, c_target, depth):
    """Deterministic synthetic parameters for one feature source."""
    params = {"mapping": [], "prenorm": {}}
    dims = [(c_in, c_in)] * (depth - 1) + [(c_in, c_target)]
    for (ci, co) in dims:
        key, k_w, k_m, k_v, k_g, k_b = jax.random.split(key, 6)
        layer = {
            # stored as PyTorch (out, in); transposed / folded at call site
            "w": 0.1 * jax.random.normal(k_w, (co, ci), jnp.float32),
            "bn_mean": 0.1 * jax.random.normal(k_m, (1, co), jnp.float32),
            "bn_var": jax.random.uniform(k_v, (1, co), jnp.float32, 0.5, 1.5),
            "bn_gamma": 1.0 + 0.1 * jax.random.normal(k_g, (1, co), jnp.float32),
            "bn_beta": 0.1 * jax.random.normal(k_b, (1, co), jnp.float32),
        }
        params["mapping"].append(layer)
    key, k_w, k_b, k_g, k_be = jax.random.split(key, 5)
    params["prenorm"] = {
        "w": 0.1 * jax.random.normal(k_w, (c_target, c_target), jnp.float32),
        "b": 0.1 * jax.random.normal(k_b, (1, c_target), jnp.float32),
        "ln_gamma": 1.0 + 0.1 * jax.random.normal(k_g, (1, c_target), jnp.float32),
        "ln_beta": 0.1 * jax.random.normal(k_be, (1, c_target), jnp.float32),
    }
    return params


def _fold_bn(params):
    """Fold eval-mode BatchNorm into the preceding (bias-free) Linear."""
    mapping_wb = []
    for layer in params["mapping"]:
        scale = layer["bn_gamma"] * lax.rsqrt(layer["bn_var"] + BN_EPS)  # (1, Co)
        w_folded = layer["w"].T * scale                                  # (Ci, Co)
        b_folded = layer["bn_beta"] - layer["bn_mean"] * scale           # (1, Co)
        mapping_wb.append((w_folded, b_folded))
    pn = params["prenorm"]
    prenorm = {"w_t": pn["w"].T, "b": pn["b"],
               "ln_gamma": pn["ln_gamma"], "ln_beta": pn["ln_beta"]}
    return mapping_wb, prenorm


def apply_source_mlp(feats, params):
    """mapping_mlp + prenorm_layer for one source, on (M, C) features."""
    mapping_wb, prenorm = _fold_bn(params)
    return fused_source_mlp(feats, mapping_wb, prenorm)


def reference_source_mlp(feats, params):
    """Pure-JAX f32 reference of mapping_mlp + prenorm_layer (PyTorch eval)."""
    x = feats.astype(jnp.float32)
    mapping_wb, prenorm = _fold_bn(params)
    for w, b in mapping_wb:
        x = jnp.maximum(x @ w + b, 0.0)
    z = x @ prenorm["w_t"] + prenorm["b"]
    mu = jnp.mean(z, axis=-1, keepdims=True)
    var = jnp.mean((z - mu) ** 2, axis=-1, keepdims=True)
    return (z - mu) * lax.rsqrt(var + LN_EPS) * prenorm["ln_gamma"] + prenorm["ln_beta"]


# -------------------- reorganize_input_for_transformer --------------------- #

def reorganize_input_for_transformer(batch_size, coords, feats, max_valid_num):
    """Scatter ragged per-batch points into dense (B, N, C) tensors + pad mask.

    coords: (M, 4) = {batch_index, x, y, z}; feats: (M, C).
    Returns features (B, N, C), points (B, N, 3), mask (B, N) 0=valid/1=pad.
    """
    # TODO(synk): data-dependent ragged scatter kept in plain JAX (pure glue).
    bidx = coords[:, 0].astype(jnp.int32)
    onehot = (bidx[:, None] == jnp.arange(batch_size)[None, :]).astype(jnp.int32)
    pos = jnp.cumsum(onehot, axis=0) - 1                          # (M, B)
    pos = jnp.take_along_axis(pos, bidx[:, None], axis=1)[:, 0]   # rank within batch
    valid = pos < max_valid_num
    pos_c = jnp.where(valid, pos, max_valid_num)  # overflow -> scratch slot

    c = feats.shape[-1]
    feat_out = jnp.zeros((batch_size, max_valid_num + 1, c), feats.dtype)
    feat_out = feat_out.at[bidx, pos_c].set(feats)[:, :max_valid_num]
    pts_out = jnp.zeros((batch_size, max_valid_num + 1, 3), coords.dtype)
    pts_out = pts_out.at[bidx, pos_c].set(coords[:, 1:4])[:, :max_valid_num]

    counts = jnp.minimum(jnp.sum(onehot, axis=0), max_valid_num)  # (B,)
    mask = (jnp.arange(max_valid_num)[None, :] >= counts[:, None]).astype(jnp.float32)
    return feat_out, pts_out, mask


# ------------------------------- full module -------------------------------- #

def mlp_processor_forward(batch_dict, cfg, all_params):
    support_sets = batch_dict["multi_scale_support_sets"]
    batch_size = batch_dict["batch_size"]
    support_features, support_points, support_mask = [], [], []
    for i, src_name in enumerate(cfg["FEATURES_SOURCE"]):
        cur_sets = support_sets[src_name]
        cur_features = apply_source_mlp(cur_sets["support_features"], all_params[i])
        cur_coords = cur_sets["support_points"]
        f, p, m = reorganize_input_for_transformer(
            batch_size, cur_coords, cur_features, cfg["MAX_VALID_NUM"])
        support_features.append(f)
        support_points.append(p)
        support_mask.append(m)
    return {"support_features": support_features,
            "support_points": support_points,
            "support_mask": support_mask}


# ----------------------------------- main ----------------------------------- #

if __name__ == "__main__":
    cfg = {
        "MAX_VALID_NUM": 16,
        "FEATURES_SOURCE": ["x_conv3", "x_conv4"],
        "INPUT_CHANNELS": [32, 16],
        "TARGET_CHANNEL": 32,
        "MAPPING_MLP_DEPTH": [2, 1],
    }
    batch_size = 2
    key = jax.random.PRNGKey(0)

    # Synthetic ragged point sets per source: (M_i, C_i) features, (M_i, 4) coords.
    src_num_points = {"x_conv3": (24, 16), "x_conv4": (10, 18)}  # per-batch counts
    support_sets = {}
    for s, (src, cin) in enumerate(zip(cfg["FEATURES_SOURCE"], cfg["INPUT_CHANNELS"])):
        n0, n1 = src_num_points[src]
        m = n0 + n1
        key, k_f, k_xyz = jax.random.split(key, 3)
        feats = jax.random.normal(k_f, (m, cin), jnp.float32)
        xyz = jax.random.uniform(k_xyz, (m, 3), jnp.float32, -10.0, 10.0)
        bidx = jnp.concatenate([jnp.zeros((n0,), jnp.float32),
                                jnp.ones((n1,), jnp.float32)])[:, None]
        coords = jnp.concatenate([bidx, xyz], axis=1)  # (M, 4)
        support_sets[src] = {"support_features": feats, "support_points": coords}

    # Deterministic parameters for every source's mapping_mlp + prenorm_layer.
    all_params = []
    for i, (cin, depth) in enumerate(zip(cfg["INPUT_CHANNELS"],
                                         cfg["MAPPING_MLP_DEPTH"])):
        all_params.append(
            init_source_params(jax.random.PRNGKey(100 + i), cin,
                               cfg["TARGET_CHANNEL"], depth))

    batch_dict = {"multi_scale_support_sets": support_sets,
                  "batch_size": batch_size}

    out = mlp_processor_forward(batch_dict, cfg, all_params)
    jax.block_until_ready(out)

    # Sanity checks: output structure, finiteness, and numerical agreement of
    # the fused (bf16-MXU) kernel against a pure-JAX f32 reference.
    for i, src in enumerate(cfg["FEATURES_SOURCE"]):
        assert out["support_features"][i].shape == (batch_size,
                                                    cfg["MAX_VALID_NUM"],
                                                    cfg["TARGET_CHANNEL"])
        assert out["support_points"][i].shape == (batch_size,
                                                  cfg["MAX_VALID_NUM"], 3)
        assert out["support_mask"][i].shape == (batch_size, cfg["MAX_VALID_NUM"])
        assert bool(jnp.all(jnp.isfinite(out["support_features"][i])))

        feats_i = support_sets[src]["support_features"]
        got = apply_source_mlp(feats_i, all_params[i])
        ref = reference_source_mlp(feats_i, all_params[i])
        assert got.shape == ref.shape
        assert bool(jnp.allclose(got, ref, atol=5e-2, rtol=5e-2)), (
            f"source {src}: max abs err {float(jnp.max(jnp.abs(got - ref)))}")

    print("KERNEL_OK")
</pallas_src>

<mosaic_0001>
module attributes {stable_mosaic.version = 11 : i64} {
  func.func @_fused_mlp_kernel(%arg0: i32, %arg1: memref<24x32xf32, #tpu.memory_space<vmem>>, %arg2: memref<32x32xbf16, #tpu.memory_space<vmem>>, %arg3: memref<32x32xbf16, #tpu.memory_space<vmem>>, %arg4: memref<32x32xbf16, #tpu.memory_space<vmem>>, %arg5: memref<5x32xf32, #tpu.memory_space<vmem>>, %arg6: memref<24x32xf32, #tpu.memory_space<vmem>>) attributes {dimension_semantics = [#tpu.dimension_semantics<parallel>], iteration_bounds = array<i64: 2>, scalar_prefetch = 0 : i64, scratch_operands = 0 : i64, tpu.core_type = #tpu.core_type<tc>, window_params = [{transform_indices = @transform_0, window_bounds = array<i64: 24, 32>}, {pipeline_mode = #tpu.pipeline_mode<synchronous>, transform_indices = @transform_1, window_bounds = array<i64: 32, 32>}, {pipeline_mode = #tpu.pipeline_mode<synchronous>, transform_indices = @transform_2, window_bounds = array<i64: 32, 32>}, {pipeline_mode = #tpu.pipeline_mode<synchronous>, transform_indices = @transform_3, window_bounds = array<i64: 32, 32>}, {pipeline_mode = #tpu.pipeline_mode<synchronous>, transform_indices = @transform_4, window_bounds = array<i64: 5, 32>}, {transform_indices = @transform_5, window_bounds = array<i64: 24, 32>}]} {
    %c0 = arith.constant 0 : index
    %c0_0 = arith.constant 0 : index
    %0 = vector.load %arg5[%c0, %c0_0] : memref<5x32xf32, #tpu.memory_space<vmem>>, vector<5x32xf32>
    %c0_1 = arith.constant 0 : index
    %c0_2 = arith.constant 0 : index
    %1 = vector.load %arg1[%c0_1, %c0_2] : memref<24x32xf32, #tpu.memory_space<vmem>>, vector<24x32xf32>
    %2 = arith.truncf %1 : vector<24x32xf32> to vector<24x32xbf16>
    %c0_3 = arith.constant 0 : index
    %c0_4 = arith.constant 0 : index
    %3 = vector.load %arg2[%c0_3, %c0_4] : memref<32x32xbf16, #tpu.memory_space<vmem>>, vector<32x32xbf16>
    %4 = vector.extract_strided_slice %0 {offsets = [0, 0], sizes = [1, 32], strides = [1, 1]} : vector<5x32xf32> to vector<1x32xf32>
    %cst = arith.constant dense<0.000000e+00> : vector<24x32xf32>
    %5 = tpu.matmul %2, %3, %cst {dimension_numbers = #tpu.dot_dimension_numbers<[1], [0], [0], [1], [0, 0, 1, 1], [], []>} : vector<24x32xbf16>, vector<32x32xbf16>, vector<24x32xf32> -> vector<24x32xf32>
    %6 = vector.broadcast %4 : vector<1x32xf32> to vector<24x32xf32>
    %7 = arith.addf %5, %6 : vector<24x32xf32>
    %cst_5 = arith.constant 0.000000e+00 : f32
    %8 = vector.broadcast %cst_5 : f32 to vector<24x32xf32>
    %9 = arith.maximumf %7, %8 : vector<24x32xf32>
    %10 = arith.truncf %9 : vector<24x32xf32> to vector<24x32xbf16>
    %c0_6 = arith.constant 0 : index
    %c0_7 = arith.constant 0 : index
    %11 = vector.load %arg3[%c0_6, %c0_7] : memref<32x32xbf16, #tpu.memory_space<vmem>>, vector<32x32xbf16>
    %12 = vector.extract_strided_slice %0 {offsets = [1, 0], sizes = [1, 32], strides = [1, 1]} : vector<5x32xf32> to vector<1x32xf32>
    %cst_8 = arith.constant dense<0.000000e+00> : vector<24x32xf32>
    %13 = tpu.matmul %10, %11, %cst_8 {dimension_numbers = #tpu.dot_dimension_numbers<[1], [0], [0], [1], [0, 0, 1, 1], [], []>} : vector<24x32xbf16>, vector<32x32xbf16>, vector<24x32xf32> -> vector<24x32xf32>
    %14 = vector.broadcast %12 : vector<1x32xf32> to vector<24x32xf32>
    %15 = arith.addf %13, %14 : vector<24x32xf32>
    %cst_9 = arith.constant 0.000000e+00 : f32
    %16 = vector.broadcast %cst_9 : f32 to vector<24x32xf32>
    %17 = arith.maximumf %15, %16 : vector<24x32xf32>
    %18 = arith.truncf %17 : vector<24x32xf32> to vector<24x32xbf16>
    %c0_10 = arith.constant 0 : index
    %c0_11 = arith.constant 0 : index
    %19 = vector.load %arg4[%c0_10, %c0_11] : memref<32x32xbf16, #tpu.memory_space<vmem>>, vector<32x32xbf16>
    %20 = vector.extract_strided_slice %0 {offsets = [2, 0], sizes = [1, 32], strides = [1, 1]} : vector<5x32xf32> to vector<1x32xf32>
    %21 = vector.extract_strided_slice %0 {offsets = [3, 0], sizes = [1, 32], strides = [1, 1]} : vector<5x32xf32> to vector<1x32xf32>
    %22 = vector.extract_strided_slice %0 {offsets = [4, 0], sizes = [1, 32], strides = [1, 1]} : vector<5x32xf32> to vector<1x32xf32>
    %cst_12 = arith.constant dense<0.000000e+00> : vector<24x32xf32>
    %23 = tpu.matmul %18, %19, %cst_12 {dimension_numbers = #tpu.dot_dimension_numbers<[1], [0], [0], [1], [0, 0, 1, 1], [], []>} : vector<24x32xbf16>, vector<32x32xbf16>, vector<24x32xf32> -> vector<24x32xf32>
    %24 = vector.broadcast %20 : vector<1x32xf32> to vector<24x32xf32>
    %25 = arith.addf %23, %24 : vector<24x32xf32>
    %cst_13 = arith.constant dense<0.000000e+00> : vector<24xf32>
    %26 = vector.multi_reduction <add>, %25, %cst_13 [1] : vector<24x32xf32> to vector<24xf32>
    %27 = vector.shape_cast %26 : vector<24xf32> to vector<24x1xf32>
    %cst_14 = arith.constant 3.200000e+01 : f32
    %28 = vector.broadcast %cst_14 : f32 to vector<24x1xf32>
    %29 = arith.divf %27, %28 : vector<24x1xf32>
    %30 = vector.broadcast %29 : vector<24x1xf32> to vector<24x32xf32>
    %31 = arith.subf %25, %30 : vector<24x32xf32>
    %32 = vector.broadcast %29 : vector<24x1xf32> to vector<24x32xf32>
    %33 = arith.subf %25, %32 : vector<24x32xf32>
    %34 = arith.mulf %31, %33 : vector<24x32xf32>
    %cst_15 = arith.constant dense<0.000000e+00> : vector<24xf32>
    %35 = vector.multi_reduction <add>, %34, %cst_15 [1] : vector<24x32xf32> to vector<24xf32>
    %36 = vector.shape_cast %35 : vector<24xf32> to vector<24x1xf32>
    %cst_16 = arith.constant 3.200000e+01 : f32
    %37 = vector.broadcast %cst_16 : f32 to vector<24x1xf32>
    %38 = arith.divf %36, %37 : vector<24x1xf32>
    %39 = vector.broadcast %29 : vector<24x1xf32> to vector<24x32xf32>
    %40 = arith.subf %25, %39 : vector<24x32xf32>
    %cst_17 = arith.constant 9.99999974E-6 : f32
    %41 = vector.broadcast %cst_17 : f32 to vector<24x1xf32>
    %42 = arith.addf %38, %41 : vector<24x1xf32>
    %43 = math.rsqrt %42 : vector<24x1xf32>
    %44 = vector.broadcast %43 : vector<24x1xf32> to vector<24x32xf32>
    %45 = arith.mulf %40, %44 : vector<24x32xf32>
    %46 = vector.broadcast %21 : vector<1x32xf32> to vector<24x32xf32>
    %47 = arith.mulf %45, %46 : vector<24x32xf32>
    %48 = vector.broadcast %22 : vector<1x32xf32> to vector<24x32xf32>
    %49 = arith.addf %47, %48 : vector<24x32xf32>
    %c24_i32 = arith.constant 24 : i32
    %50 = arith.muli %arg0, %c24_i32 : i32
    %51 = tpu.iota {dimensions = array<i32: 0>} : vector<24x32xi32>
    %52 = vector.broadcast %50 : i32 to vector<24x32xi32>
    %53 = arith.addi %52, %51 : vector<24x32xi32>
    %c40_i32 = arith.constant 40 : i32
    %54 = vector.broadcast %c40_i32 : i32 to vector<24x32xi32>
    %55 = arith.cmpi slt, %53, %54 : vector<24x32xi32>
    %cst_18 = arith.constant 0.000000e+00 : f32
    %56 = vector.broadcast %cst_18 : f32 to vector<24x32xf32>
    %57 = arith.select %55, %49, %56 : vector<24x32xi1>, vector<24x32xf32>
    %c0_19 = arith.constant 0 : index
    %c0_20 = arith.constant 0 : index
    %58 = vector.load %arg6[%c0_19, %c0_20] : memref<24x32xf32, #tpu.memory_space<vmem>>, vector<24x32xf32>
    tpu.vector_store %arg6[%c0_19, %c0_20], %57 {strides = array<i32>} : memref<24x32xf32, #tpu.memory_space<vmem>>, vector<24x32xf32>,
    return
  }
  func.func @transform_0(%arg0: i32) -> (i32, i32) {
    %c0_i32 = arith.constant 0 : i32
    %c0_i32_0 = arith.constant 0 : i32
    return %arg0, %c0_i32 : i32, i32
  }
  func.func @transform_1(%arg0: i32) -> (i32, i32) {
    %c0_i32 = arith.constant 0 : i32
    %c0_i32_0 = arith.constant 0 : i32
    %c0_i32_1 = arith.constant 0 : i32
    return %c0_i32, %c0_i32_0 : i32, i32
  }
  func.func @transform_2(%arg0: i32) -> (i32, i32) {
    %c0_i32 = arith.constant 0 : i32
    %c0_i32_0 = arith.constant 0 : i32
    %c0_i32_1 = arith.constant 0 : i32
    return %c0_i32, %c0_i32_0 : i32, i32
  }
  func.func @transform_3(%arg0: i32) -> (i32, i32) {
    %c0_i32 = arith.constant 0 : i32
    %c0_i32_0 = arith.constant 0 : i32
    %c0_i32_1 = arith.constant 0 : i32
    return %c0_i32, %c0_i32_0 : i32, i32
  }
  func.func @transform_4(%arg0: i32) -> (i32, i32) {
    %c0_i32 = arith.constant 0 : i32
    %c0_i32_0 = arith.constant 0 : i32
    %c0_i32_1 = arith.constant 0 : i32
    return %c0_i32, %c0_i32_0 : i32, i32
  }
  func.func @transform_5(%arg0: i32) -> (i32, i32) {
    %c0_i32 = arith.constant 0 : i32
    %c0_i32_0 = arith.constant 0 : i32
    return %arg0, %c0_i32 : i32, i32
  }
}

</mosaic_0001>

<bundles_post_ra>
// kernel: tpu_custom_call.1
= control target key start
LH: loop header
LB: loop body
LE: loop exit
PB: predicated region body
PF: predicated region fallthrough
CT: control target
= control target key end

     0   :  { %s1073_s18 = smov 0   ;;  %s1075_s19 = smov 0   ;;  %s1209_s0 = inlined_call_operand.vmem [shape: f32[40,32], index: 0, kind: input, shape index: {}]   ;;  %s1210_s1 = inlined_call_operand.vmem [shape: bf16[32,32], index: 1, kind: input, shape index: {}]   ;;  %s1211_s2 = inlined_call_operand.vmem [shape: bf16[32,32], index: 2, kind: input, shape index: {}]   ;;  %s1212_s3 = inlined_call_operand.vmem [shape: bf16[32,32], index: 3, kind: input, shape index: {}]   ;;  %s1213_s4 = inlined_call_operand.vmem [shape: f32[5,32], index: 4, kind: input, shape index: {}]   ;;  %s1214_s5 = inlined_call_operand.vmem [shape: f32[40,32], index: 5, kind: output, shape index: {}]  }
   0x1   :  { %s1077_s20 = smov 0  }
   0x2 LB: > { %s1086_s21 = sadd.s32 4294967295, %s1009_s20   ;;  %s1088_s22 = sadd.s32 1, %s1009_s20   ;;  %s1009_s20 = sphi %s1077_s20, %s1218_s20   ;;  %s1005_s19 = sphi %s1075_s19, %s1217_s19   ;;  %s1001_s18 = sphi %s1073_s18, %s1216_s18  }
   0x3   : > { %s129_s23 = ssub.s32 %s1009_s20, %s1088_s22  ;;  %s132_s24 = sadd.s32 1, %s1005_s19 }
   0x4   : > { %p130_p0 = scmp.eq.s32.totalorder %s129_s23, 0  ;;  %p142_p1 = scmp.ne.s32.totalorder %s1005_s19, %s1001_s18 }
   0x5   : > { %p143_p2 = scmp.eq.s32.totalorder %s1086_s21, 1  ;;  %p786_p3 = scmp.ge.s32.totalorder %s1009_s20, 1 }
   0x6   : > { %s1096_s25 = scalar_select %p130_p0, %s1005_s19, %s132_s24  }
   0x7   : > { %p1098_p4 = por %p143_p2, %p142_p1  ;;  %p196_p5 = scmp.lt.s32.totalorder %s1009_s20, 3 }
   0x9   : > { %p197_p6 = pnand %p786_p3, %p196_p5 }
   0xa   : > { %v939_v0 = vld [vmem:[%s1210_s1] sm:$0xff] (!%p197_p6)   ;;  %s1106_s29 = smul.u32 (!%p197_p6), 3, %s1086_s21  ;;  %v940_v1 = vld [vmem:[%s1210_s1 + $0x8] sm:$0xff] (!%p197_p6)   ;;  %vm273_vm0 = vcmask (!%p197_p6), 261120   ;;  %v257_v9 = vlaneseq (!%p197_p6)  ;;  %s224_s30 = sand.u32 (!%p197_p6), 1, %s1001_s18  }
   0xb   : > { %200 = sbr.rel (%p197_p6) target bundleno = 1066 (0x42a), region = 40  ;;  %825 = vmatprep.subr.bf16.mxu0 (!%p197_p6), %v939_v0  ;;  %v941_v7 = vld [vmem:[%s1211_s2] sm:$0xff] (!%p197_p6)   ;;  %v942_v8 = vld [vmem:[%s1211_s2 + $0x8] sm:$0xff] (!%p197_p6)  }
   0xc   : > { %p232_p7 = scmp.lt.s32.totalorder (!%p197_p6), %s1106_s29, 4  ;;  %826 = vmatpush3.bf16.msra.mxu0 (!%p197_p6), %v939_v0  ;;  %833 = vmatprep.subr.bf16.mxu1 (!%p197_p6), %v941_v7  ;;  %v1124_v10 = vshrl.u32 (!%p197_p6), %v257_v9, 7  ;;  %v1130_v12 = vld [vmem:[%s1213_s4] sm:$0x1f] (!%p197_p6)  ;;  %v944_v27 = vld [vmem:[%s1212_s3 + $0x8] sm:$0xff] (!%p197_p6)   ;;  %s540_s28 = smul.u32 (!%p197_p6), 24, %s1086_s21 }
   0xd   : > { %827 = vmatprep.subr.bf16.mxu0 (!%p197_p6), %v940_v1  ;;  %834 = vmatpush3.bf16.msra.mxu1 (!%p197_p6), %v941_v7  ;;  %v943_v26 = vld [vmem:[%s1212_s3] sm:$0xff] (!%p197_p6)   ;;  %s849_s6 = smul.u32 (!%p197_p6), 24, %s224_s30 }
   0xe   : > { %835 = vmatprep.subr.bf16.mxu1 (!%p197_p6), %v942_v8  ;;  %v259_v11 = vsub.s32 (!%p197_p6), 0, %v1124_v10  ;;  %v339_v28 = vsub.s32 (!%p197_p6), 1, %v1124_v10  ;;  %v418_v42 = vsub.s32 (!%p197_p6), 2, %v1124_v10 }
   0xf   : > { %s1164_s18 = scalar_lea.vmem (!%p197_p6), [#allocation2], %s849_s6  }
  0x10   : > { %828 = vmatpush3.bf16.msra.mxu0 (!%p197_p6), %v940_v1  ;;  %v260_v13 = vrot.slane (!%p197_p6), %v1130_v12, %v259_v11  ;;  %v340_v29 = vrot.slane (!%p197_p6), %v1130_v12, %v339_v28  ;;  %v419_v43 = vrot.slane (!%p197_p6), %v1130_v12, %v418_v42 }
  0x11   : > { %836 = vmatpush3.bf16.msra.mxu1 (!%p197_p6), %v942_v8  ;;  %841 = vmatprep.subr.bf16.mxu0 (!%p197_p6), %v943_v26 }
  0x12   : > { %s233_s7 = scalar_select %p232_p7, %s1106_s29, 4 }
  0x13   : > { %s1180_s10 = scalar_lea.vmem (%p1098_p4), %s1214_s5, %s540_s28  }
  0x14   : > { %s787_s8 = sshll.u32 %s233_s7, 3  ;;  %s566_s7 = ssub.s32 (%p1098_p4), 5, %s1106_s29 }
  0x15   : > { %s235_s11 = scalar_lea.vmem %s1209_s0, %s787_s8  ;;  %p567_p8 = scmp.lt.s32.totalorder (%p1098_p4), %s566_s7, 3 }
  0x16   : > { %v248_v2 = vld [vmem:[%s235_s11] sm:$0xff]  ;;  %v249_v3 = vld [vmem:[%s235_s11 + $0x8] sm:$0xff]  ;;  %v250_v4 = vld [vmem:[%s235_s11 + $0x10] sm:$0xff] }
  0x17   : > { %v251_v5 = vpack.c.bf16 %v249_v3, %v248_v2  ;;  %v252_v6 = vpack.c.bf16 %v250_v4, %v250_v4 }
  0x19   : > { %829 = vmatprep.mubr.msk.bf16.mxu0 %vm273_vm0, %v251_v5 }
  0x1a   : > { %830 = vmatmul.mubr.msk.bf16.vlgmr.msra.gmra.mrb[0].mxu0 %vm273_vm0, %v252_v6 }
  0x1b   : > { %842 = vmatpush3.bf16.msra.mxu0 %v943_v26 }
  0x1c   : > { %843 = vmatprep.subr.bf16.mxu0 %v944_v27 }
  0x1f   : > { %844 = vmatpush3.bf16.msra.mxu0 %v944_v27 }
  0xed   : > { %v831_v14 = vpop.f32.mrb[0].mxu0 }
  0xee   : > { %v323_v15 = vadd.f32 %v831_v14, %v260_v13  ;;  %v314_v16 = vpop.f32.mrb[1].mxu0 }
  0xef   : > { %v315_v17 = vadd.f32 %v314_v16, %v260_v13  ;;  %v832_v18 = vpop.f32.mrb[2].mxu0  ;;  %v528_v16 = vsub.s32 3, %v1124_v10 }
  0xf0   : > { %v317_v19 = vpop.f32.mrb[3].mxu0  ;;  %v330_v21 = vmax.f32 %v323_v15, 0.0  ;;  %v545_v18 = vstv %s540_s28 }
  0xf1   : > { %v318_v20 = vadd.f32 %v317_v19, %v260_v13  ;;  %v328_v22 = vmax.f32 %v315_v17, 0.0  ;;  %v535_v17 = vsub.s32 4, %v1124_v10  ;;  %v529_v19 = vrot.slane %v1130_v12, %v528_v16 }
  0xf2   : > { %v332_v25 = vpack.c.bf16 %v330_v21, %v330_v21  ;;  %v546_v21 = vadd.s32 %v545_v18, %v1124_v10 }
  0xf3   : > { %v329_v23 = vmax.f32 %v318_v20, 0.0 }
  0xf4   : > { %vm549_vm1 = vcmp.lt.s32.totalorder %v546_v21, 40 }
  0xf5   : > { %v331_v24 = vpack.c.bf16 %v329_v23, %v328_v22  ;;  %v544_v22 = vadd.s32 16, %v1124_v10  ;;  %v536_v23 = vrot.slane %v1130_v12, %v535_v17 }
  0xf7   : > { %837 = vmatprep.mubr.msk.bf16.mxu1 %vm273_vm0, %v331_v24  ;;  %v548_v28 = vadd.s32 %v545_v18, %v544_v22 }
  0xf8   : > { %838 = vmatmul.mubr.msk.bf16.vlgmr.msra.gmra.mrb[0].mxu1 %vm273_vm0, %v332_v25  ;;  %v543_v25 = vadd.s32 8, %v1124_v10 }
  0xf9   : > { %vm551_vm2 = vcmp.lt.s32.totalorder %v548_v28, 40 }
 0x1cb   : > { %v839_v30 = vpop.f32.mrb[0].mxu1 }
 0x1cc   : > { %v402_v31 = vadd.f32 %v839_v30, %v340_v29  ;;  %v393_v32 = vpop.f32.mrb[1].mxu1 }
 0x1cd   : > { %v394_v33 = vadd.f32 %v393_v32, %v340_v29  ;;  %v840_v34 = vpop.f32.mrb[2].mxu1  ;;  %v547_v32 = vadd.s32 %v545_v18, %v543_v25 }
 0x1ce   : > { %v396_v35 = vpop.f32.mrb[3].mxu1  ;;  %v409_v37 = vmax.f32 %v402_v31, 0.0 }
 0x1cf   : > { %v397_v36 = vadd.f32 %v396_v35, %v340_v29  ;;  %v407_v38 = vmax.f32 %v394_v33, 0.0  ;;  %vm550_vm3 = vcmp.lt.s32.totalorder %v547_v32, 40 }
 0x1d0   : > { %v411_v41 = vpack.c.bf16 %v409_v37, %v409_v37 }
 0x1d1   : > { %v408_v39 = vmax.f32 %v397_v36, 0.0 }
 0x1d3   : > { %v410_v40 = vpack.c.bf16 %v408_v39, %v407_v38 }
 0x1d5   : > { %845 = vmatprep.mubr.msk.bf16.mxu0 %vm273_vm0, %v410_v40 }
 0x1d6   : > { %846 = vmatmul.mubr.msk.bf16.vlgmr.msra.gmra.mrb[4].mxu0 %vm273_vm0, %v411_v41 }
 0x2a9   : > { %v847_v44 = vpop.f32.mrb[4].mxu0 }
 0x2aa   : > { %v481_v45 = vadd.f32 %v847_v44, %v419_v43  ;;  %v472_v46 = vpop.f32.mrb[5].mxu0 }
 0x2ab   : > { %v473_v47 = vadd.f32 %v472_v46, %v419_v43  ;;  %v848_v48 = vpop.f32.mrb[6].mxu0 }
 0x2ac   : > { %v475_v49 = vpop.f32.mrb[7].mxu0  ;;  %v492_v50 = vsel %vm273_vm0, %v481_v45, 0.0 }
 0x2ad   : > { %v476_v51 = vadd.f32 %v475_v49, %v419_v43  ;;  %493 = vadd.xlane.f32.xlu1 %v492_v50  ;;  %v486_v52 = vsel %vm273_vm0, %v473_v47, 0.0 }
 0x2ae   : > { %487 = vadd.xlane.f32.xlu0 %v486_v52 }
 0x2af   : > { %v489_v53 = vsel %vm273_vm0, %v476_v51, 0.0 }
 0x2b2   : > { %490 = vadd.xlane.f32.xlu0 %v489_v53 }
 0x33a   : > { %v494_v54 = vpop.xlane.xlu1 %493 }
 0x33b   : > { %v498_v55 = vmul.f32 0.03125, %v494_v54  ;;  %v488_v56 = vpop.xlane.xlu0 %487 }
 0x33c   : > { %v496_v57 = vmul.f32 0.03125, %v488_v56 }
 0x33d   : > { %v501_v58 = vsub.f32 %v481_v45, %v498_v55 }
 0x33e   : > { %v499_v59 = vsub.f32 %v473_v47, %v496_v57 }
 0x33f   : > { %v491_v60 = vpop.xlane.xlu0 %490  ;;  %v504_v1 = vmul.f32 %v501_v58, %v501_v58 }
 0x340   : > { %v497_v61 = vmul.f32 0.03125, %v491_v60  ;;  %v502_v62 = vmul.f32 %v499_v59, %v499_v59 }
 0x341   : > { %v511_v3 = vsel %vm273_vm0, %v504_v1, 0.0 }
 0x342   : > { %v500_v63 = vsub.f32 %v476_v51, %v497_v61  ;;  %v505_v0 = vsel %vm273_vm0, %v502_v62, 0.0 }
 0x343   : > { %506 = vadd.xlane.f32.xlu1 %v505_v0 }
 0x344   : > { %v503_v2 = vmul.f32 %v500_v63, %v500_v63 }
 0x346   : > { %v508_v4 = vsel %vm273_vm0, %v503_v2, 0.0 }
 0x347   : > { %512 = vadd.xlane.f32.xlu1 %v511_v3  ;;  %509 = vadd.xlane.f32.xlu0 %v508_v4 }
 0x3d0   : > { %v507_v5 = vpop.xlane.xlu1 %506 }
 0x3d1   : > { %v514_v6 = vmul.f32 0.03125, %v507_v5 }
 0x3d3   : > { %v517_v7 = vadd.f32 1e-05, %v514_v6 }
 0x3d4   : > { %v513_v8 = vpop.xlane.xlu1 %512  ;;  %v510_v9 = vpop.xlane.xlu0 %509 }
 0x3d5   : > { %945 = vrsqrt.f32 %v517_v7  ;;  %v516_v11 = vmul.f32 0.03125, %v513_v8  ;;  %v515_v13 = vmul.f32 0.03125, %v510_v9 }
 0x3d7   : > { %v519_v14 = vadd.f32 1e-05, %v516_v11  ;;  %v518_v15 = vadd.f32 1e-05, %v515_v13 }
 0x3d9   : > { %947 = vrsqrt.f32 %v519_v14 }
 0x3da   : > { %949 = vrsqrt.f32 %v518_v15 }
 0x3df   : > { %v946_v20 = vpop.eup %945 }
 0x3e0   : > { %v523_v24 = vmul.f32 %v946_v20, %v499_v59 }
 0x3e2   : > { %v530_v26 = vmul.f32 %v529_v19, %v523_v24 }
 0x3e3   : > { %v948_v27 = vpop.eup %947 }
 0x3e4   : > { %v950_v29 = vpop.eup %949  ;;  %v537_v30 = vadd.f32 %v536_v23, %v530_v26  ;;  %v525_v31 = vmul.f32 %v948_v27, %v501_v58 }
 0x3e5   : > { %v524_v33 = vmul.f32 %v950_v29, %v500_v63 }
 0x3e6   : > { %v552_v34 = vsel %vm549_vm1, %v537_v30, 0.0  ;;  %v532_v35 = vmul.f32 %v529_v19, %v525_v31  ;;  %564 = sbr.rel (!%p1098_p4) target bundleno = 1066 (0x42a), region = 44 }
 0x3e7   : > { %555 = vst.msk [vmem:[%s1164_s18] sm:$0xff] %vm273_vm0, %v552_v34  ;;  %v531_v10 = vmul.f32 %v529_v19, %v524_v33 }
 0x3e8   : > { %v539_v12 = vadd.f32 %v536_v23, %v532_v35 }
 0x3e9   : > { %v538_v36 = vadd.f32 %v536_v23, %v531_v10 }
 0x3ea   : > { %v554_v37 = vsel %vm551_vm2, %v539_v12, 0.0 }
 0x3eb   : > { %557 = vst.msk [vmem:[%s1164_s18 + $0x10] sm:$0xff] %vm273_vm0, %v554_v37  ;;  %v553_v38 = vsel %vm550_vm3, %v538_v36, 0.0 }
 0x3ec   : > { %556 = vst.msk [vmem:[%s1164_s18 + $0x8] sm:$0xff] %vm273_vm0, %v553_v38 }
 0x3ed   : > { %s1220_s7 = smov (!%p567_p8, %s566_s7), 3 }
 0x3ee   : > { %s800_s11 = sshll.u32 %s1220_s7, 7 }
 0x3ef   : > { %p803_p9 = scmp.eq.s32.totalorder %s800_s11, 0 }
 0x3f0   : > { %951 = sdivrem.u32 (!%p803_p9), %s1220_s7, 3 }
 0x3f1   : > { %575 = sbr.rel (%p803_p9) target bundleno = 1066 (0x42a), region = 48 }
 0x3f9   : > { %s1186_s26 = spop.drf %951 }
 0x3fa   : > { %p804_p10 = scmp.le.s32.totalorder %s1186_s26, 0 }
 0x3fb   : > { %s1011_s21 = smov (!%p804_p10), %s1180_s10   ;;  %s1015_s29 = smov (!%p804_p10), %s1164_s18  }
 0x3fc   : > { %739 = sbr.rel (%p804_p10) target bundleno = 1037 (0x40d), region = 124  ;;  %s1019_s12 = smov (!%p804_p10), 0  }
 0x3fd   : > { %s1023_s13 = smov (!%p804_p10), 0  }
 0x403 LB: >> { %v643_v39 = vld [vmem:[%s1017_s29] sm:$0xff]  ;;  %v645_v40 = vld [vmem:[%s1017_s29 + $0x8] sm:$0xff]  ;;  %v647_v41 = vld [vmem:[%s1017_s29 + $0x10] sm:$0xff]  ;;  %s649_s14 = sadd.s32 1, %s1021_s12  ;;  %s637_s13 = sadd.s32 1, %s1025_s13   ;;  %s1025_s13 = sphi %s1023_s13, %s637_s13   ;;  %s1021_s12 = sphi %s1019_s12, %s1020_s12   ;;  %s1017_s29 = sphi %s1015_s29, %s654_s29   ;;  %s1013_s21 = sphi %s1011_s21, %s655_s21  }
 0x404   : >> { %644 = vst [vmem:[%s1013_s21] sm:$0xff] %v643_v39  ;;  %646 = vst [vmem:[%s1013_s21 + $0x8] sm:$0xff] %v645_v40  ;;  %p650_p11 = scmp.ge.s32.totalorder %s649_s14, %s1186_s26  ;;  %p636_p12 = scmp.ge.s32.totalorder %s637_s13, %s1186_s26 }
 0x405   : >> { %648 = vst [vmem:[%s1013_s21 + $0x10] sm:$0xff] %v647_v41 }
 0x406   : >> { %s1222_s14 = smov (%p650_p11, %s649_s14), 0  ;;  %639 = sbr.rel (!%p636_p12) target bundleno = 1027 (0x403), region = 130 }
 0x407   : >> { %s652_s15 = smul.u32 24, %s1222_s14  ;;  %s1020_s12 = smov %s1222_s14  }
 0x409   : >> { %s654_s29 = scalar_lea.vmem %s1164_s18, %s652_s15 [#allocation2]   ;;  %s655_s21 = scalar_lea.vmem %s1180_s10, %s652_s15  }
 0x40d PF: > { %953 = sdivrem.u32 %s1220_s7, 3 }
 0x40e   : > { %s805_s16 = smul.u32 24, %s1186_s26 }
 0x410   : > { %s660_s17 = scalar_lea.vmem %s1164_s18, %s805_s16 [#allocation2]   ;;  %s662_s20 = scalar_lea.vmem %s1180_s10, %s805_s16  }
 0x416   : > { %s954_s23 = spop.drf %953 }
 0x417   : > { %p807_p13 = scmp.le.s32.totalorder %s954_s23, 0 }
 0x418   : > { %s1027_s24 = smov (!%p807_p13), %s662_s20   ;;  %s1031_s27 = smov (!%p807_p13), %s660_s17  }
 0x419   : > { %753 = sbr.rel (%p807_p13) target bundleno = 1066 (0x42a), region = 135  ;;  %s1035_s28 = smov (!%p807_p13), 0  }
 0x41a   : > { %s1039_s30 = smov (!%p807_p13), 0  }
 0x420 LB: >> { %v672_v42 = vld [vmem:[%s1033_s27] sm:$0xff]  ;;  %s674_s6 = sadd.s32 1, %s1037_s28  ;;  %s666_s30 = sadd.s32 1, %s1041_s30   ;;  %s1041_s30 = sphi %s1039_s30, %s666_s30   ;;  %s1037_s28 = sphi %s1035_s28, %s1036_s28   ;;  %s1033_s27 = sphi %s1031_s27, %s679_s27   ;;  %s1029_s24 = sphi %s1027_s24, %s680_s24  }
 0x421   : >> { %673 = vst [vmem:[%s1029_s24] sm:$0xff] %v672_v42  ;;  %p675_p0 = scmp.ge.s32.totalorder %s674_s6, %s954_s23  ;;  %p665_p1 = scmp.ge.s32.totalorder %s666_s30, %s954_s23 }
 0x423   : >> { %s1224_s6 = smov (%p675_p0, %s674_s6), 0  ;;  %668 = sbr.rel (!%p665_p1) target bundleno = 1056 (0x420), region = 141 }
 0x424   : >> { %s808_s18 = sshll.u32 %s1224_s6, 3  ;;  %s1036_s28 = smov %s1224_s6  }
 0x425   : >> { %s679_s27 = scalar_lea.vmem %s660_s17, %s808_s18 [#allocation2]   ;;  %s680_s24 = scalar_lea.vmem %s662_s20, %s808_s18  }
 0x42a PF: > { %p12_p2 = scmp.ge.s32.totalorder %s1088_s22, 4   ;;  %s1216_s18 = smov %s1005_s19 }
 0x42b   : > { %s1217_s19 = smov %s1096_s25  ;;  %s1218_s20 = smov %s1088_s22 }
 0x42c   :  { %14 = sbr.rel (!%p12_p2) target bundleno = 2 (0x2), region = 152 }

</bundles_post_ra>
